<compile_context>
chip_gen: v6e
topology: v6e:2x2x1
jax: 0.10.0
libtpu: 0.0.40
codegen_flags: <defaults>
</compile_context>

<pallas_src>
from functools import partial

import jax
import jax.numpy as jnp
from jax.experimental import pallas as pl
from jax.experimental.pallas import tpu as pltpu


def decoder_kernel(z_ref, wih_t_ref, whh_t_ref, b_ref, wout_ref, bout_ref, out_ref):
    """LSTM-decoder forward.

    z_ref:     (B, L)   f32, VMEM   -- latent vector per batch element
    wih_t_ref: (L, 4L)  f32, VMEM   -- input->hidden weights, transposed, gate order [i,f,g,o]
    whh_t_ref: (L, 4L)  f32, VMEM   -- hidden->hidden weights, transposed
    b_ref:     (1, 4L)  f32, VMEM   -- b_ih + b_hh combined
    wout_ref:  (1, L)   f32, VMEM   -- output Linear weight (out_size=1)
    bout_ref:  (1,)     f32, SMEM   -- output Linear bias (scalar)
    out_ref:   (W, B)   f32, VMEM   -- per-timestep scalar output
    """
    L = z_ref.shape[1]
    W = out_ref.shape[0]

    z = z_ref[...]                                     # (B, L)
    # LSTM input is z at *every* timestep -> input gate contribution is
    # loop-invariant: hoist it out of the recurrence.
    gates_x = (
        jnp.dot(z, wih_t_ref[...], preferred_element_type=jnp.float32)
        + b_ref[...]
    )                                                  # (B, 4L)

    whh_t = whh_t_ref[...]                             # (L, 4L), loop-invariant
    wout = wout_ref[...]                               # (1, L)
    bout = bout_ref[0]                                 # scalar

    h = jnp.zeros_like(z)
    c = jnp.zeros_like(z)
    hs = []

    # Fully unrolled recurrence (W is a small static trip count). Only the
    # h/c chain is serial; everything else overlaps across steps.
    for _ in range(W):
        gates = gates_x + jnp.dot(h, whh_t, preferred_element_type=jnp.float32)  # (B, 4L)
        # One EUP sigmoid push over the full (B, 4L) vreg; slice i/f/o from it.
        sg = jax.nn.sigmoid(gates)
        i_g = sg[:, 0 * L:1 * L]
        f_g = sg[:, 1 * L:2 * L]
        o_g = sg[:, 3 * L:4 * L]
        g_g = jnp.tanh(gates[:, 2 * L:3 * L])
        c = f_g * c + i_g * g_g
        h = o_g * jnp.tanh(c)
        hs.append(h)

    # Output Linear(L, 1) applied to all W hidden states at once:
    # out[t, b] = sum_l hs[t, b, l] * wout[0, l] + bout
    hs_all = jnp.stack(hs, axis=0)                     # (W, B, L)
    out_ref[...] = jnp.sum(hs_all * wout, axis=-1) + bout   # single full-block store


def prepare_params(params):
    """Pre-transpose LSTM weights and combine biases for the kernel layout."""
    w_ih, w_hh, b_ih, b_hh, w_out, b_out = params
    L = w_ih.shape[1]
    wih_t = jnp.transpose(w_ih)                  # (L, 4L)
    whh_t = jnp.transpose(w_hh)                  # (L, 4L)
    bias = (b_ih + b_hh).reshape(1, 4 * L)       # (1, 4L)
    bout = b_out.reshape(1)                      # (1,)
    return wih_t, whh_t, bias, w_out, bout


@partial(jax.jit, static_argnames=("window",))
def decoder_forward(z, params, window):
    """z: (1, B, L) f32. Returns (B, W, 1) f32, matching the PyTorch module."""
    wih_t, whh_t, bias, w_out, bout = prepare_params(params)
    z2d = z[0]                                   # squeeze num_layers dim -> (B, L)
    B, L = z2d.shape
    W = window

    # All data resident in VMEM (~tens of KiB); no grid / pipelining needed.
    # (A batch-parallel grid only pays off on v7x with much larger B.)
    out_wb = pl.pallas_call(
        decoder_kernel,
        out_shape=jax.ShapeDtypeStruct((W, B), jnp.float32),
        in_specs=[
            pl.BlockSpec(memory_space=pltpu.MemorySpace.VMEM),  # z (B, L)
            pl.BlockSpec(memory_space=pltpu.MemorySpace.VMEM),  # wih_t (L, 4L)
            pl.BlockSpec(memory_space=pltpu.MemorySpace.VMEM),  # whh_t (L, 4L)
            pl.BlockSpec(memory_space=pltpu.MemorySpace.VMEM),  # bias (1, 4L)
            pl.BlockSpec(memory_space=pltpu.MemorySpace.VMEM),  # wout (1, L)
            pl.BlockSpec(memory_space=pltpu.MemorySpace.SMEM),  # bout (1,)
        ],
        out_specs=pl.BlockSpec(memory_space=pltpu.MemorySpace.VMEM),
    )(z2d, wih_t, whh_t, bias, w_out, bout)

    # (W, B) -> (B, W, 1); fused by jit, negligible at these shapes.
    return jnp.transpose(out_wb)[:, :, None]


def decoder_reference(z, params, window):
    """Pure-JAX reference mirroring torch.nn.LSTM + Linear semantics."""
    w_ih, w_hh, b_ih, b_hh, w_out, b_out = params
    z2d = z[0]
    B, L = z2d.shape
    h = jnp.zeros((B, L), jnp.float32)
    c = jnp.zeros((B, L), jnp.float32)
    outs = []
    for _ in range(window):
        gates = z2d @ w_ih.T + b_ih + h @ w_hh.T + b_hh
        i_g = jax.nn.sigmoid(gates[:, 0 * L:1 * L])
        f_g = jax.nn.sigmoid(gates[:, 1 * L:2 * L])
        g_g = jnp.tanh(gates[:, 2 * L:3 * L])
        o_g = jax.nn.sigmoid(gates[:, 3 * L:4 * L])
        c = f_g * c + i_g * g_g
        h = o_g * jnp.tanh(c)
        outs.append(h @ w_out.T + b_out)         # (B, 1)
    return jnp.stack(outs, axis=1)               # (B, W, 1)


def init_params(key, latent_size):
    """Deterministic init, PyTorch-style U(-1/sqrt(H), 1/sqrt(H))."""
    L = latent_size
    k = 1.0 / jnp.sqrt(jnp.float32(L))
    keys = jax.random.split(key, 6)
    w_ih = jax.random.uniform(keys[0], (4 * L, L), jnp.float32, -k, k)
    w_hh = jax.random.uniform(keys[1], (4 * L, L), jnp.float32, -k, k)
    b_ih = jax.random.uniform(keys[2], (4 * L,), jnp.float32, -k, k)
    b_hh = jax.random.uniform(keys[3], (4 * L,), jnp.float32, -k, k)
    w_out = jax.random.uniform(keys[4], (1, L), jnp.float32, -k, k)
    b_out = jax.random.uniform(keys[5], (1,), jnp.float32, -k, k)
    return (w_ih, w_hh, b_ih, b_hh, w_out, b_out)


if __name__ == "__main__":
    latent_size = 32
    batch = 2
    window = 8

    key = jax.random.PRNGKey(0)
    k_param, k_z = jax.random.split(key)
    params = init_params(k_param, latent_size)
    z = jax.random.normal(k_z, (1, batch, latent_size), jnp.float32)

    out = decoder_forward(z, params, window)
    out = jax.block_until_ready(out)

    ref = decoder_reference(z, params, window)
    assert out.shape == (batch, window, 1), out.shape
    assert jnp.allclose(out, ref, rtol=1e-4, atol=1e-4), (
        float(jnp.max(jnp.abs(out - ref)))
    )
    print("KERNEL_OK")
</pallas_src>

<mosaic_0001>
module attributes {stable_mosaic.version = 11 : i64} {
  func.func @decoder_kernel(%arg0: memref<2x32xf32, #tpu.memory_space<vmem>>, %arg1: memref<32x128xf32, #tpu.memory_space<vmem>>, %arg2: memref<32x128xf32, #tpu.memory_space<vmem>>, %arg3: memref<1x128xf32, #tpu.memory_space<vmem>>, %arg4: memref<1x32xf32, #tpu.memory_space<vmem>>, %arg5: memref<1xf32, #tpu.memory_space<smem>>, %arg6: memref<8x2xf32, #tpu.memory_space<vmem>>) attributes {dimension_semantics = [], scalar_prefetch = 0 : i64, scratch_operands = 0 : i64, tpu.core_type = #tpu.core_type<tc>} {
    %c0 = arith.constant 0 : index
    %c0_0 = arith.constant 0 : index
    %0 = vector.load %arg0[%c0, %c0_0] : memref<2x32xf32, #tpu.memory_space<vmem>>, vector<2x32xf32>
    %c0_1 = arith.constant 0 : index
    %c0_2 = arith.constant 0 : index
    %1 = vector.load %arg1[%c0_1, %c0_2] : memref<32x128xf32, #tpu.memory_space<vmem>>, vector<32x128xf32>
    %cst = arith.constant dense<0.000000e+00> : vector<2x128xf32>
    %2 = tpu.matmul %0, %1, %cst {dimension_numbers = #tpu.dot_dimension_numbers<[1], [0], [0], [1], [0, 0, 1, 1], [], []>} : vector<2x32xf32>, vector<32x128xf32>, vector<2x128xf32> -> vector<2x128xf32>
    %c0_3 = arith.constant 0 : index
    %c0_4 = arith.constant 0 : index
    %3 = vector.load %arg3[%c0_3, %c0_4] : memref<1x128xf32, #tpu.memory_space<vmem>>, vector<1x128xf32>
    %4 = vector.broadcast %3 : vector<1x128xf32> to vector<2x128xf32>
    %5 = arith.addf %2, %4 : vector<2x128xf32>
    %c0_5 = arith.constant 0 : index
    %c0_6 = arith.constant 0 : index
    %6 = vector.load %arg2[%c0_5, %c0_6] : memref<32x128xf32, #tpu.memory_space<vmem>>, vector<32x128xf32>
    %c0_7 = arith.constant 0 : index
    %c0_8 = arith.constant 0 : index
    %7 = vector.load %arg4[%c0_7, %c0_8] : memref<1x32xf32, #tpu.memory_space<vmem>>, vector<1x32xf32>
    %c0_9 = arith.constant 0 : index
    %8 = memref.load %arg5[%c0_9] : memref<1xf32, #tpu.memory_space<smem>>
    %cst_10 = arith.constant 0.000000e+00 : f32
    %9 = vector.broadcast %cst_10 : f32 to vector<2x32xf32>
    %cst_11 = arith.constant 0.000000e+00 : f32
    %10 = vector.broadcast %cst_11 : f32 to vector<2x32xf32>
    %cst_12 = arith.constant dense<0.000000e+00> : vector<2x128xf32>
    %11 = tpu.matmul %9, %6, %cst_12 {dimension_numbers = #tpu.dot_dimension_numbers<[1], [0], [0], [1], [0, 0, 1, 1], [], []>} : vector<2x32xf32>, vector<32x128xf32>, vector<2x128xf32> -> vector<2x128xf32>
    %12 = arith.addf %5, %11 : vector<2x128xf32>
    %13 = arith.negf %12 : vector<2x128xf32>
    %14 = math.exp %13 : vector<2x128xf32>
    %cst_13 = arith.constant 1.000000e+00 : f32
    %15 = vector.broadcast %cst_13 : f32 to vector<2x128xf32>
    %16 = arith.addf %15, %14 : vector<2x128xf32>
    %17 = arith.divf %15, %16 : vector<2x128xf32>
    %18 = vector.extract_strided_slice %17 {offsets = [0, 0], sizes = [2, 32], strides = [1, 1]} : vector<2x128xf32> to vector<2x32xf32>
    %19 = vector.extract_strided_slice %17 {offsets = [0, 32], sizes = [2, 32], strides = [1, 1]} : vector<2x128xf32> to vector<2x32xf32>
    %20 = vector.extract_strided_slice %17 {offsets = [0, 96], sizes = [2, 32], strides = [1, 1]} : vector<2x128xf32> to vector<2x32xf32>
    %21 = vector.extract_strided_slice %12 {offsets = [0, 64], sizes = [2, 32], strides = [1, 1]} : vector<2x128xf32> to vector<2x32xf32>
    %22 = math.tanh %21 : vector<2x32xf32>
    %23 = arith.mulf %19, %10 : vector<2x32xf32>
    %24 = arith.mulf %18, %22 : vector<2x32xf32>
    %25 = arith.addf %23, %24 : vector<2x32xf32>
    %26 = math.tanh %25 : vector<2x32xf32>
    %27 = arith.mulf %20, %26 : vector<2x32xf32>
    %cst_14 = arith.constant dense<0.000000e+00> : vector<2x128xf32>
    %28 = tpu.matmul %27, %6, %cst_14 {dimension_numbers = #tpu.dot_dimension_numbers<[1], [0], [0], [1], [0, 0, 1, 1], [], []>} : vector<2x32xf32>, vector<32x128xf32>, vector<2x128xf32> -> vector<2x128xf32>
    %29 = arith.addf %5, %28 : vector<2x128xf32>
    %30 = arith.negf %29 : vector<2x128xf32>
    %31 = math.exp %30 : vector<2x128xf32>
    %cst_15 = arith.constant 1.000000e+00 : f32
    %32 = vector.broadcast %cst_15 : f32 to vector<2x128xf32>
    %33 = arith.addf %32, %31 : vector<2x128xf32>
    %34 = arith.divf %32, %33 : vector<2x128xf32>
    %35 = vector.extract_strided_slice %34 {offsets = [0, 0], sizes = [2, 32], strides = [1, 1]} : vector<2x128xf32> to vector<2x32xf32>
    %36 = vector.extract_strided_slice %34 {offsets = [0, 32], sizes = [2, 32], strides = [1, 1]} : vector<2x128xf32> to vector<2x32xf32>
    %37 = vector.extract_strided_slice %34 {offsets = [0, 96], sizes = [2, 32], strides = [1, 1]} : vector<2x128xf32> to vector<2x32xf32>
    %38 = vector.extract_strided_slice %29 {offsets = [0, 64], sizes = [2, 32], strides = [1, 1]} : vector<2x128xf32> to vector<2x32xf32>
    %39 = math.tanh %38 : vector<2x32xf32>
    %40 = arith.mulf %36, %25 : vector<2x32xf32>
    %41 = arith.mulf %35, %39 : vector<2x32xf32>
    %42 = arith.addf %40, %41 : vector<2x32xf32>
    %43 = math.tanh %42 : vector<2x32xf32>
    %44 = arith.mulf %37, %43 : vector<2x32xf32>
    %cst_16 = arith.constant dense<0.000000e+00> : vector<2x128xf32>
    %45 = tpu.matmul %44, %6, %cst_16 {dimension_numbers = #tpu.dot_dimension_numbers<[1], [0], [0], [1], [0, 0, 1, 1], [], []>} : vector<2x32xf32>, vector<32x128xf32>, vector<2x128xf32> -> vector<2x128xf32>
    %46 = arith.addf %5, %45 : vector<2x128xf32>
    %47 = arith.negf %46 : vector<2x128xf32>
    %48 = math.exp %47 : vector<2x128xf32>
    %cst_17 = arith.constant 1.000000e+00 : f32
    %49 = vector.broadcast %cst_17 : f32 to vector<2x128xf32>
    %50 = arith.addf %49, %48 : vector<2x128xf32>
    %51 = arith.divf %49, %50 : vector<2x128xf32>
    %52 = vector.extract_strided_slice %51 {offsets = [0, 0], sizes = [2, 32], strides = [1, 1]} : vector<2x128xf32> to vector<2x32xf32>
    %53 = vector.extract_strided_slice %51 {offsets = [0, 32], sizes = [2, 32], strides = [1, 1]} : vector<2x128xf32> to vector<2x32xf32>
    %54 = vector.extract_strided_slice %51 {offsets = [0, 96], sizes = [2, 32], strides = [1, 1]} : vector<2x128xf32> to vector<2x32xf32>
    %55 = vector.extract_strided_slice %46 {offsets = [0, 64], sizes = [2, 32], strides = [1, 1]} : vector<2x128xf32> to vector<2x32xf32>
    %56 = math.tanh %55 : vector<2x32xf32>
    %57 = arith.mulf %53, %42 : vector<2x32xf32>
    %58 = arith.mulf %52, %56 : vector<2x32xf32>
    %59 = arith.addf %57, %58 : vector<2x32xf32>
    %60 = math.tanh %59 : vector<2x32xf32>
    %61 = arith.mulf %54, %60 : vector<2x32xf32>
    %cst_18 = arith.constant dense<0.000000e+00> : vector<2x128xf32>
    %62 = tpu.matmul %61, %6, %cst_18 {dimension_numbers = #tpu.dot_dimension_numbers<[1], [0], [0], [1], [0, 0, 1, 1], [], []>} : vector<2x32xf32>, vector<32x128xf32>, vector<2x128xf32> -> vector<2x128xf32>
    %63 = arith.addf %5, %62 : vector<2x128xf32>
    %64 = arith.negf %63 : vector<2x128xf32>
    %65 = math.exp %64 : vector<2x128xf32>
    %cst_19 = arith.constant 1.000000e+00 : f32
    %66 = vector.broadcast %cst_19 : f32 to vector<2x128xf32>
    %67 = arith.addf %66, %65 : vector<2x128xf32>
    %68 = arith.divf %66, %67 : vector<2x128xf32>
    %69 = vector.extract_strided_slice %68 {offsets = [0, 0], sizes = [2, 32], strides = [1, 1]} : vector<2x128xf32> to vector<2x32xf32>
    %70 = vector.extract_strided_slice %68 {offsets = [0, 32], sizes = [2, 32], strides = [1, 1]} : vector<2x128xf32> to vector<2x32xf32>
    %71 = vector.extract_strided_slice %68 {offsets = [0, 96], sizes = [2, 32], strides = [1, 1]} : vector<2x128xf32> to vector<2x32xf32>
    %72 = vector.extract_strided_slice %63 {offsets = [0, 64], sizes = [2, 32], strides = [1, 1]} : vector<2x128xf32> to vector<2x32xf32>
    %73 = math.tanh %72 : vector<2x32xf32>
    %74 = arith.mulf %70, %59 : vector<2x32xf32>
    %75 = arith.mulf %69, %73 : vector<2x32xf32>
    %76 = arith.addf %74, %75 : vector<2x32xf32>
    %77 = math.tanh %76 : vector<2x32xf32>
    %78 = arith.mulf %71, %77 : vector<2x32xf32>
    %cst_20 = arith.constant dense<0.000000e+00> : vector<2x128xf32>
    %79 = tpu.matmul %78, %6, %cst_20 {dimension_numbers = #tpu.dot_dimension_numbers<[1], [0], [0], [1], [0, 0, 1, 1], [], []>} : vector<2x32xf32>, vector<32x128xf32>, vector<2x128xf32> -> vector<2x128xf32>
    %80 = arith.addf %5, %79 : vector<2x128xf32>
    %81 = arith.negf %80 : vector<2x128xf32>
    %82 = math.exp %81 : vector<2x128xf32>
    %cst_21 = arith.constant 1.000000e+00 : f32
    %83 = vector.broadcast %cst_21 : f32 to vector<2x128xf32>
    %84 = arith.addf %83, %82 : vector<2x128xf32>
    %85 = arith.divf %83, %84 : vector<2x128xf32>
    %86 = vector.extract_strided_slice %85 {offsets = [0, 0], sizes = [2, 32], strides = [1, 1]} : vector<2x128xf32> to vector<2x32xf32>
    %87 = vector.extract_strided_slice %85 {offsets = [0, 32], sizes = [2, 32], strides = [1, 1]} : vector<2x128xf32> to vector<2x32xf32>
    %88 = vector.extract_strided_slice %85 {offsets = [0, 96], sizes = [2, 32], strides = [1, 1]} : vector<2x128xf32> to vector<2x32xf32>
    %89 = vector.extract_strided_slice %80 {offsets = [0, 64], sizes = [2, 32], strides = [1, 1]} : vector<2x128xf32> to vector<2x32xf32>
    %90 = math.tanh %89 : vector<2x32xf32>
    %91 = arith.mulf %87, %76 : vector<2x32xf32>
    %92 = arith.mulf %86, %90 : vector<2x32xf32>
    %93 = arith.addf %91, %92 : vector<2x32xf32>
    %94 = math.tanh %93 : vector<2x32xf32>
    %95 = arith.mulf %88, %94 : vector<2x32xf32>
    %cst_22 = arith.constant dense<0.000000e+00> : vector<2x128xf32>
    %96 = tpu.matmul %95, %6, %cst_22 {dimension_numbers = #tpu.dot_dimension_numbers<[1], [0], [0], [1], [0, 0, 1, 1], [], []>} : vector<2x32xf32>, vector<32x128xf32>, vector<2x128xf32> -> vector<2x128xf32>
    %97 = arith.addf %5, %96 : vector<2x128xf32>
    %98 = arith.negf %97 : vector<2x128xf32>
    %99 = math.exp %98 : vector<2x128xf32>
    %cst_23 = arith.constant 1.000000e+00 : f32
    %100 = vector.broadcast %cst_23 : f32 to vector<2x128xf32>
    %101 = arith.addf %100, %99 : vector<2x128xf32>
    %102 = arith.divf %100, %101 : vector<2x128xf32>
    %103 = vector.extract_strided_slice %102 {offsets = [0, 0], sizes = [2, 32], strides = [1, 1]} : vector<2x128xf32> to vector<2x32xf32>
    %104 = vector.extract_strided_slice %102 {offsets = [0, 32], sizes = [2, 32], strides = [1, 1]} : vector<2x128xf32> to vector<2x32xf32>
    %105 = vector.extract_strided_slice %102 {offsets = [0, 96], sizes = [2, 32], strides = [1, 1]} : vector<2x128xf32> to vector<2x32xf32>
    %106 = vector.extract_strided_slice %97 {offsets = [0, 64], sizes = [2, 32], strides = [1, 1]} : vector<2x128xf32> to vector<2x32xf32>
    %107 = math.tanh %106 : vector<2x32xf32>
    %108 = arith.mulf %104, %93 : vector<2x32xf32>
    %109 = arith.mulf %103, %107 : vector<2x32xf32>
    %110 = arith.addf %108, %109 : vector<2x32xf32>
    %111 = math.tanh %110 : vector<2x32xf32>
    %112 = arith.mulf %105, %111 : vector<2x32xf32>
    %cst_24 = arith.constant dense<0.000000e+00> : vector<2x128xf32>
    %113 = tpu.matmul %112, %6, %cst_24 {dimension_numbers = #tpu.dot_dimension_numbers<[1], [0], [0], [1], [0, 0, 1, 1], [], []>} : vector<2x32xf32>, vector<32x128xf32>, vector<2x128xf32> -> vector<2x128xf32>
    %114 = arith.addf %5, %113 : vector<2x128xf32>
    %115 = arith.negf %114 : vector<2x128xf32>
    %116 = math.exp %115 : vector<2x128xf32>
    %cst_25 = arith.constant 1.000000e+00 : f32
    %117 = vector.broadcast %cst_25 : f32 to vector<2x128xf32>
    %118 = arith.addf %117, %116 : vector<2x128xf32>
    %119 = arith.divf %117, %118 : vector<2x128xf32>
    %120 = vector.extract_strided_slice %119 {offsets = [0, 0], sizes = [2, 32], strides = [1, 1]} : vector<2x128xf32> to vector<2x32xf32>
    %121 = vector.extract_strided_slice %119 {offsets = [0, 32], sizes = [2, 32], strides = [1, 1]} : vector<2x128xf32> to vector<2x32xf32>
    %122 = vector.extract_strided_slice %119 {offsets = [0, 96], sizes = [2, 32], strides = [1, 1]} : vector<2x128xf32> to vector<2x32xf32>
    %123 = vector.extract_strided_slice %114 {offsets = [0, 64], sizes = [2, 32], strides = [1, 1]} : vector<2x128xf32> to vector<2x32xf32>
    %124 = math.tanh %123 : vector<2x32xf32>
    %125 = arith.mulf %121, %110 : vector<2x32xf32>
    %126 = arith.mulf %120, %124 : vector<2x32xf32>
    %127 = arith.addf %125, %126 : vector<2x32xf32>
    %128 = math.tanh %127 : vector<2x32xf32>
    %129 = arith.mulf %122, %128 : vector<2x32xf32>
    %cst_26 = arith.constant dense<0.000000e+00> : vector<2x128xf32>
    %130 = tpu.matmul %129, %6, %cst_26 {dimension_numbers = #tpu.dot_dimension_numbers<[1], [0], [0], [1], [0, 0, 1, 1], [], []>} : vector<2x32xf32>, vector<32x128xf32>, vector<2x128xf32> -> vector<2x128xf32>
    %131 = arith.addf %5, %130 : vector<2x128xf32>
    %132 = arith.negf %131 : vector<2x128xf32>
    %133 = math.exp %132 : vector<2x128xf32>
    %cst_27 = arith.constant 1.000000e+00 : f32
    %134 = vector.broadcast %cst_27 : f32 to vector<2x128xf32>
    %135 = arith.addf %134, %133 : vector<2x128xf32>
    %136 = arith.divf %134, %135 : vector<2x128xf32>
    %137 = vector.extract_strided_slice %136 {offsets = [0, 0], sizes = [2, 32], strides = [1, 1]} : vector<2x128xf32> to vector<2x32xf32>
    %138 = vector.extract_strided_slice %136 {offsets = [0, 32], sizes = [2, 32], strides = [1, 1]} : vector<2x128xf32> to vector<2x32xf32>
    %139 = vector.extract_strided_slice %136 {offsets = [0, 96], sizes = [2, 32], strides = [1, 1]} : vector<2x128xf32> to vector<2x32xf32>
    %140 = vector.extract_strided_slice %131 {offsets = [0, 64], sizes = [2, 32], strides = [1, 1]} : vector<2x128xf32> to vector<2x32xf32>
    %141 = math.tanh %140 : vector<2x32xf32>
    %142 = arith.mulf %138, %127 : vector<2x32xf32>
    %143 = arith.mulf %137, %141 : vector<2x32xf32>
    %144 = arith.addf %142, %143 : vector<2x32xf32>
    %145 = math.tanh %144 : vector<2x32xf32>
    %146 = arith.mulf %139, %145 : vector<2x32xf32>
    %147 = vector.shape_cast %27 : vector<2x32xf32> to vector<1x2x32xf32>
    %148 = vector.shape_cast %44 : vector<2x32xf32> to vector<1x2x32xf32>
    %149 = vector.shape_cast %61 : vector<2x32xf32> to vector<1x2x32xf32>
    %150 = vector.shape_cast %78 : vector<2x32xf32> to vector<1x2x32xf32>
    %151 = vector.shape_cast %95 : vector<2x32xf32> to vector<1x2x32xf32>
    %152 = vector.shape_cast %112 : vector<2x32xf32> to vector<1x2x32xf32>
    %153 = vector.shape_cast %129 : vector<2x32xf32> to vector<1x2x32xf32>
    %154 = vector.shape_cast %146 : vector<2x32xf32> to vector<1x2x32xf32>
    %155 = tpu.concatenate %147, %148, %149, %150, %151, %152, %153, %154 in 0 : vector<1x2x32xf32>, vector<1x2x32xf32>, vector<1x2x32xf32>, vector<1x2x32xf32>, vector<1x2x32xf32>, vector<1x2x32xf32>, vector<1x2x32xf32>, vector<1x2x32xf32> -> vector<8x2x32xf32>
    %156 = vector.shape_cast %7 : vector<1x32xf32> to vector<1x1x32xf32>
    %157 = vector.broadcast %156 : vector<1x1x32xf32> to vector<8x2x32xf32>
    %158 = arith.mulf %155, %157 : vector<8x2x32xf32>
    %cst_28 = arith.constant dense<0.000000e+00> : vector<8x2xf32>
    %159 = vector.multi_reduction <add>, %158, %cst_28 [2] : vector<8x2x32xf32> to vector<8x2xf32>
    %160 = vector.broadcast %8 : f32 to vector<8x2xf32>
    %161 = arith.addf %159, %160 : vector<8x2xf32>
    %c0_29 = arith.constant 0 : index
    %c0_30 = arith.constant 0 : index
    %162 = vector.load %arg6[%c0_29, %c0_30] : memref<8x2xf32, #tpu.memory_space<vmem>>, vector<8x2xf32>
    tpu.vector_store %arg6[%c0_29, %c0_30], %161 {strides = array<i32>} : memref<8x2xf32, #tpu.memory_space<vmem>>, vector<8x2xf32>,
    return
  }
}

</mosaic_0001>

<bundles_post_ra>
// kernel: decoder_forward.1
= control target key start
LH: loop header
LB: loop body
LE: loop exit
PB: predicated region body
PF: predicated region fallthrough
CT: control target
= control target key end

     0   :  { %12 = vsyncpa [#allocation4], 0  ;;  %s1617_s0 = inlined_call_operand.vmem [shape: f32[2,32], index: 0, kind: input, shape index: {}]   ;;  %s1618_s1 = inlined_call_operand.hbm [shape: f32[32,128], index: 1, kind: input, shape index: {}]   ;;  %s1619_s2 = inlined_call_operand.hbm [shape: f32[32,128], index: 2, kind: input, shape index: {}]   ;;  %s1620_s3 = inlined_call_operand.vmem [shape: f32[1,128], index: 3, kind: input, shape index: {}]   ;;  %s1621_s4 = inlined_call_operand.vmem [shape: f32[1,32], index: 4, kind: input, shape index: {}]   ;;  %s1622_s5 = inlined_call_operand.<no memory space> [shape: f32[1], index: 5, kind: input, shape index: {}]   ;;  %s1623_s6 = inlined_call_operand.vmem [shape: f32[8,2], index: 6, kind: output, shape index: {}]  }
   0x1   :  { %13 = vsyncpa [#allocation6], 0  ;;  %s1368_s21 = smov [#allocation3]  }
   0x2   :  { %s21_s22 = sshll.u32 %s1368_s21, 4  ;;  %s22_s22 = int_to_ptr.vmem [resolvable:$true] %s21_s22 }
   0x3   :  { %s1332_s23 = scalar_lea.vmem %s22_s22, 512  ;;  %p1337_p1 = scmp.lt.s32.totalorder %s22_s22, %s22_s22 }
   0x4   :  { %p1333_p0 = scmp.ne.s32.totalorder %s22_s22, %s1332_s23  ;;  %p1338_p2 = scmp.lt.s32.totalorder %s1332_s23, %s1332_s23 }
   0x6   :  { %p1339_p3 = por %p1338_p2, %p1337_p1 }
   0x8   :  { %p1340_p4 = pnand %p1339_p3, %p1333_p0 }
   0xa   :  { %1343 = shalt.err (!%p1340_p4)
}
   0xb   :  { %s1369_s24 = smov 128   ;;  %s1370_s25 = smov 8  }
   0xc   :  { %27 = dma.hbm_to_vmem [thread:$0]  %s1618_s1, 512, %s22_s22, [#allocation4], %s1369_s24, %s1369_s24, %s1370_s25  }
   0xd   :  { %s1371_s28 = smov [#allocation5]  }
   0xe   :  { %s33_s29 = sshll.u32 %s1371_s28, 4  ;;  %s34_s29 = int_to_ptr.vmem [resolvable:$true] %s33_s29 }
   0xf   :  { %s1352_s30 = scalar_lea.vmem %s34_s29, 512  ;;  %p1357_p6 = scmp.lt.s32.totalorder %s34_s29, %s34_s29 }
  0x10   :  { %p1353_p5 = scmp.ne.s32.totalorder %s34_s29, %s1352_s30  ;;  %p1358_p7 = scmp.lt.s32.totalorder %s1352_s30, %s1352_s30 }
  0x12   :  { %p1359_p8 = por %p1358_p7, %p1357_p6 }
  0x14   :  { %p1360_p9 = pnand %p1359_p8, %p1353_p5 }
  0x16   :  { %1363 = shalt.err (!%p1360_p9)
}
  0x17   :  { %39 = dma.hbm_to_vmem [thread:$0]  %s1619_s2, 512, %s34_s29, [#allocation6], %s1369_s24, %s1369_s24, %s1370_s25  }
  0x18   :  { %1364 = dma.done.wait [#allocation4], 512  }
  0x19   :  { %1365 = vsyncadd [#allocation4], 4294966784 }
  0x1a   :  { %1366 = dma.done.wait [#allocation6], 512  }
  0x1b   :  { %1367 = vsyncadd [#allocation6], 4294966784  ;;  %v1372_v0 = vmov 0.0   ;;  %vm1373_vm0 = vmmov 0   ;;  %v56_v1 = vld [vmem:[#allocation3 + $0x18] sm:$0xff]  ;;  %v55_v3 = vld [vmem:[#allocation3 + $0x10] sm:$0xff] }
  0x1c   :  { %1152 = vmatprep.subr.mxu0 %v1372_v0  ;;  %1163 = vmatprep.subr.mxu1 %v1372_v0  ;;  %v1424_v2 = vld [vmem:[#allocation5 + $0x18] sm:$0xff]  ;;  %v1427_v4 = vld [vmem:[#allocation5 + $0x10] sm:$0xff]  ;;  %v54_v5 = vld [vmem:[#allocation3 + $0x8] sm:$0xff]  ;;  %vm64_vm1 = vcmask 261120   ;;  %s1374_s10 = smov 64   ;;  %s1376_s13 = smov 96  }
  0x1d   :  { %1160 = vmatprep.mubr.msk.f32.mxu0 %vm1373_vm0, %v1372_v0  ;;  %1171 = vmatprep.mubr.msk.f32.mxu1 %vm1373_vm0, %v1372_v0  ;;  %v1431_v6 = vld [vmem:[#allocation5 + $0x8] sm:$0xff]  ;;  %v53_v7 = vld [vmem:[#allocation3] sm:$0xff]  ;;  %vm990_vm2 = vcmask 254976   ;;  %vm1066_vm3 = vcmask 1041409   ;;  %vm1068_vm4 = vcmask 1042434   ;;  %vm1070_vm5 = vcmask 1043459  }
  0x1e   :  { %1153 = vmatpush3.msra.mxu0 %v56_v1  ;;  %1164 = vmatpush3.msra.mxu1 %v1424_v2  ;;  %v1436_v8 = vld [vmem:[#allocation5] sm:$0xff]  ;;  %vm1072_vm6 = vcmask 1044484   ;;  %vm1074_vm7 = vcmask 1045509   ;;  %vm1076_vm8 = vcmask 1046534   ;;  %vm1078_vm9 = vcmask 1047559  }
  0x1f   :  { %1154 = vmatprep.subr.mxu0 %v1372_v0  ;;  %1165 = vmatprep.subr.mxu1 %v1372_v0  ;;  %v52_v9 = vld [vmem:[%s1617_s0] sm:$0x3]  ;;  %vm1081_vm10 = vcmask 15360  }
  0x20   :  { %1155 = vmatpush3.msra.mxu0 %v55_v3  ;;  %1166 = vmatpush3.msra.mxu1 %v1427_v4  ;;  %v1089_v10 = vld [vmem:[%s1620_s3] ss:$0 sm:$0xff]  ;;  %s1375_s3 = smov 32  }
  0x21   :  { %1156 = vmatprep.subr.mxu0 %v1372_v0  ;;  %1167 = vmatprep.subr.mxu1 %v1372_v0 }
  0x22   :  { %1157 = vmatpush3.msra.mxu0 %v54_v5  ;;  %1168 = vmatpush3.msra.mxu1 %v1431_v6 }
  0x23   :  { %1158 = vmatprep.subr.mxu0 %v1372_v0  ;;  %1169 = vmatprep.subr.mxu1 %v1372_v0 }
  0x24   :  { %1159 = vmatpush3.msra.mxu0 %v53_v7  ;;  %1170 = vmatpush3.msra.mxu1 %v1436_v8 }
  0x25   :  { %1161 = vmatmul.mubr.msk.f32.vlgmr.msra.gmra.mxu0 %vm64_vm1, %v52_v9  ;;  %1172 = vmatmul.mubr.f32.vlgmr.msra.gmra.mxu1 %v1372_v0 }
  0x26   :  { %1174 = vmatprep.subr.mxu0 %v1372_v0  ;;  %1182 = vmatprep.mubr.msk.f32.mxu0 %vm1373_vm0, %v1372_v0 }
  0x27   :  { %1175 = vmatpush3.msra.mxu0 %v1424_v2  ;;  %1185 = vmatprep.subr.mxu1 %v1372_v0 }
  0x28   :  { %1176 = vmatprep.subr.mxu0 %v1372_v0  ;;  %1186 = vmatpush3.msra.mxu1 %v1424_v2 }
  0x29   :  { %1177 = vmatpush3.msra.mxu0 %v1427_v4  ;;  %1187 = vmatprep.subr.mxu1 %v1372_v0 }
  0x2a   :  { %1178 = vmatprep.subr.mxu0 %v1372_v0  ;;  %1188 = vmatpush3.msra.mxu1 %v1427_v4 }
  0x2b   :  { %1179 = vmatpush3.msra.mxu0 %v1431_v6  ;;  %1189 = vmatprep.subr.mxu1 %v1372_v0 }
  0x2c   :  { %1180 = vmatprep.subr.mxu0 %v1372_v0  ;;  %1190 = vmatpush3.msra.mxu1 %v1431_v6 }
  0x2d   :  { %1181 = vmatpush3.msra.mxu0 %v1436_v8  ;;  %1191 = vmatprep.subr.mxu1 %v1372_v0 }
  0x2e   :  { %1192 = vmatpush3.msra.mxu1 %v1436_v8  ;;  %1193 = vmatprep.mubr.msk.f32.mxu1 %vm1373_vm0, %v1372_v0 }
  0x2f   :  { %1196 = vmatprep.subr.mxu0 %v1372_v0  ;;  %1207 = vmatprep.subr.mxu1 %v1372_v0 }
  0xe5   :  { %v134_v11 = vpop.f32.mrf.mxu0  ;;  %v213_v12 = vpop.f32.mrf.mxu1 }
  0xe6   :  { %v1472_v13 = vadd.f32 %v1089_v10, %v134_v11 }
  0xe7   :  { %v1162_v14 = vpop.f32.mrf.mxu0  ;;  %v1173_v15 = vpop.f32.mrf.mxu1 }
  0xe8   :  { %v217_v16 = vadd.f32 %v213_v12, %v1472_v13 }
  0xea   :  { %1260 = vtanh.f32 %v217_v16  ;;  %v1091_v18 = vmul.f32 -1.442695, %v217_v16 }
  0xec   :  { %1262 = vpow2.f32 %v1091_v18 }
  0xf7   :  { %v1261_v17 = vpop.eup %1260 }
  0xf8   :  { %227 = vrot.lane.b32.xlu0 %v1261_v17, %s1374_s10 }
  0xf9   :  { %v1263_v19 = vpop.eup %1262 }
  0xfa   :  { %v221_v20 = vadd.f32 1.0, %v1263_v19 }
  0xfc   :  { %1264 = vrcp.f32 %v221_v20 }
 0x109   :  { %v1265_v21 = vpop.eup %1264 }
 0x10a   :  { %v225_v24 = vmul.f32 0.0, %v1265_v21 }
 0x16a   :  { %v228_v22 = vpop.permute.xlu0 %227 }
 0x16b   :  { %v230_v23 = vmul.f32 %v1265_v21, %v228_v22 }
 0x16d   :  { %232 = vrot.lane.b32.xlu0 %v230_v23, %s1375_s3 }
 0x1df   :  { %v233_v25 = vpop.permute.xlu0 %232 }
 0x1e0   :  { %v235_v26 = vadd.f32 %v233_v25, %v225_v24 }
 0x1e2   :  { %1266 = vtanh.f32 %v235_v26 }
 0x1ef   :  { %v1267_v27 = vpop.eup %1266 }
 0x1f0   :  { %238 = vrot.lane.b32.xlu1 %v1267_v27, %s1374_s10 }
 0x262   :  { %v239_v28 = vpop.permute.xlu1 %238 }
 0x263   :  { %v1478_v29 = vmul.f32 %v1265_v21, %v239_v28 }
 0x265   :  { %243 = vrot.lane.b32.xlu1 %v1478_v29, %s1375_s3 }
 0x2d7   :  { %v244_v30 = vpop.permute.xlu1 %243 }
 0x2d8   :  { %1183 = vmatmul.mubr.msk.f32.vlgmr.msra.gmra.mxu0 %vm64_vm1, %v244_v30 }
 0x2d9   :  { %1197 = vmatpush3.msra.mxu0 %v1424_v2  ;;  %1204 = vmatprep.mubr.msk.f32.mxu0 %vm1373_vm0, %v1372_v0 }
 0x2da   :  { %1198 = vmatprep.subr.mxu0 %v1372_v0 }
 0x2db   :  { %1199 = vmatpush3.msra.mxu0 %v1427_v4 }
 0x2dc   :  { %1200 = vmatprep.subr.mxu0 %v1372_v0 }
 0x2dd   :  { %1201 = vmatpush3.msra.mxu0 %v1431_v6 }
 0x2de   :  { %1202 = vmatprep.subr.mxu0 %v1372_v0 }
 0x2df   :  { %1203 = vmatpush3.msra.mxu0 %v1436_v8 }
 0x2e0   :  { %1218 = vmatprep.subr.mxu0 %v1372_v0 }
 0x398   :  { %v313_v31 = vpop.f32.mrf.mxu0 }
 0x399   :  { %v317_v32 = vadd.f32 %v313_v31, %v1472_v13 }
 0x39a   :  { %v1184_v33 = vpop.f32.mrf.mxu0 }
 0x39b   :  { %1268 = vtanh.f32 %v317_v32  ;;  %v1093_v35 = vmul.f32 -1.442695, %v317_v32 }
 0x39d   :  { %1270 = vpow2.f32 %v1093_v35 }
 0x3a8   :  { %v1269_v34 = vpop.eup %1268 }
 0x3a9   :  { %327 = vrot.lane.b32.xlu0 %v1269_v34, %s1374_s10 }
 0x3aa   :  { %v1271_v36 = vpop.eup %1270 }
 0x3ab   :  { %v321_v37 = vadd.f32 1.0, %v1271_v36 }
 0x3ad   :  { %1272 = vrcp.f32 %v321_v37 }
 0x3ba   :  { %v1273_v38 = vpop.eup %1272 }
 0x3bb   :  { %v325_v41 = vmul.f32 %v1273_v38, %v235_v26 }
 0x41b   :  { %v328_v39 = vpop.permute.xlu0 %327 }
 0x41c   :  { %v330_v40 = vmul.f32 %v1273_v38, %v328_v39 }
 0x41e   :  { %332 = vrot.lane.b32.xlu1 %v330_v40, %s1375_s3 }
 0x490   :  { %v333_v42 = vpop.permute.xlu1 %332 }
 0x491   :  { %v335_v43 = vadd.f32 %v333_v42, %v325_v41 }
 0x493   :  { %1274 = vtanh.f32 %v335_v43 }
 0x4a0   :  { %v1275_v44 = vpop.eup %1274 }
 0x4a1   :  { %338 = vrot.lane.b32.xlu0 %v1275_v44, %s1374_s10 }
 0x513   :  { %v339_v45 = vpop.permute.xlu0 %338 }
 0x514   :  { %v1497_v46 = vmul.f32 %v1273_v38, %v339_v45 }
 0x516   :  { %343 = vrot.lane.b32.xlu1 %v1497_v46, %s1375_s3 }
 0x588   :  { %v344_v47 = vpop.permute.xlu1 %343 }
 0x589   :  { %1194 = vmatmul.mubr.msk.f32.vlgmr.msra.gmra.mxu1 %vm64_vm1, %v344_v47 }
 0x58a   :  { %1208 = vmatpush3.msra.mxu1 %v1424_v2  ;;  %1215 = vmatprep.mubr.msk.f32.mxu1 %vm1373_vm0, %v1372_v0 }
 0x58b   :  { %1209 = vmatprep.subr.mxu1 %v1372_v0 }
 0x58c   :  { %1210 = vmatpush3.msra.mxu1 %v1427_v4 }
 0x58d   :  { %1211 = vmatprep.subr.mxu1 %v1372_v0 }
 0x58e   :  { %1212 = vmatpush3.msra.mxu1 %v1431_v6 }
 0x58f   :  { %1213 = vmatprep.subr.mxu1 %v1372_v0 }
 0x590   :  { %1214 = vmatpush3.msra.mxu1 %v1436_v8 }
 0x591   :  { %1229 = vmatprep.subr.mxu1 %v1372_v0 }
 0x649   :  { %v413_v48 = vpop.f32.mrf.mxu1 }
 0x64a   :  { %v417_v49 = vadd.f32 %v413_v48, %v1472_v13 }
 0x64b   :  { %v1195_v50 = vpop.f32.mrf.mxu1 }
 0x64c   :  { %1276 = vtanh.f32 %v417_v49  ;;  %v1095_v52 = vmul.f32 -1.442695, %v417_v49 }
 0x64e   :  { %1278 = vpow2.f32 %v1095_v52 }
 0x659   :  { %v1277_v51 = vpop.eup %1276 }
 0x65a   :  { %427 = vrot.lane.b32.xlu0 %v1277_v51, %s1374_s10 }
 0x65b   :  { %v1279_v53 = vpop.eup %1278 }
 0x65c   :  { %v421_v54 = vadd.f32 1.0, %v1279_v53 }
 0x65e   :  { %1280 = vrcp.f32 %v421_v54 }
 0x66b   :  { %v1281_v55 = vpop.eup %1280 }
 0x66c   :  { %v425_v58 = vmul.f32 %v1281_v55, %v335_v43 }
 0x6cc   :  { %v428_v56 = vpop.permute.xlu0 %427 }
 0x6cd   :  { %v430_v57 = vmul.f32 %v1281_v55, %v428_v56 }
 0x6cf   :  { %432 = vrot.lane.b32.xlu1 %v430_v57, %s1375_s3 }
 0x741   :  { %v433_v59 = vpop.permute.xlu1 %432 }
 0x742   :  { %v435_v60 = vadd.f32 %v433_v59, %v425_v58 }
 0x744   :  { %1282 = vtanh.f32 %v435_v60 }
 0x751   :  { %v1283_v61 = vpop.eup %1282 }
 0x752   :  { %438 = vrot.lane.b32.xlu0 %v1283_v61, %s1374_s10 }
 0x7c4   :  { %v439_v62 = vpop.permute.xlu0 %438 }
 0x7c5   :  { %v1516_v63 = vmul.f32 %v1281_v55, %v439_v62 }
 0x7c7   :  { %443 = vrot.lane.b32.xlu1 %v1516_v63, %s1375_s3 }
 0x839   :  { %v444_v1 = vpop.permute.xlu1 %443 }
 0x83a   :  { %1205 = vmatmul.mubr.msk.f32.vlgmr.msra.gmra.mxu0 %vm64_vm1, %v444_v1 }
 0x83b   :  { %1219 = vmatpush3.msra.mxu0 %v1424_v2  ;;  %1226 = vmatprep.mubr.msk.f32.mxu0 %vm1373_vm0, %v1372_v0 }
 0x83c   :  { %1220 = vmatprep.subr.mxu0 %v1372_v0 }
 0x83d   :  { %1221 = vmatpush3.msra.mxu0 %v1427_v4 }
 0x83e   :  { %1222 = vmatprep.subr.mxu0 %v1372_v0 }
 0x83f   :  { %1223 = vmatpush3.msra.mxu0 %v1431_v6 }
 0x840   :  { %1224 = vmatprep.subr.mxu0 %v1372_v0 }
 0x841   :  { %1225 = vmatpush3.msra.mxu0 %v1436_v8 }
 0x842   :  { %1240 = vmatprep.subr.mxu0 %v1372_v0 }
 0x8fa   :  { %v513_v3 = vpop.f32.mrf.mxu0 }
 0x8fb   :  { %v517_v5 = vadd.f32 %v513_v3, %v1472_v13 }
 0x8fc   :  { %v1206_v7 = vpop.f32.mrf.mxu0 }
 0x8fd   :  { %1284 = vtanh.f32 %v517_v5  ;;  %v1097_v10 = vmul.f32 -1.442695, %v517_v5 }
 0x8ff   :  { %1286 = vpow2.f32 %v1097_v10 }
 0x90a   :  { %v1285_v9 = vpop.eup %1284 }
 0x90b   :  { %527 = vrot.lane.b32.xlu0 %v1285_v9, %s1374_s10 }
 0x90c   :  { %v1287_v11 = vpop.eup %1286 }
 0x90d   :  { %v521_v12 = vadd.f32 1.0, %v1287_v11 }
 0x90f   :  { %1288 = vrcp.f32 %v521_v12 }
 0x91c   :  { %v1289_v14 = vpop.eup %1288 }
 0x91d   :  { %v525_v17 = vmul.f32 %v1289_v14, %v435_v60 }
 0x97d   :  { %v528_v15 = vpop.permute.xlu0 %527 }
 0x97e   :  { %v530_v16 = vmul.f32 %v1289_v14, %v528_v15 }
 0x980   :  { %532 = vrot.lane.b32.xlu1 %v530_v16, %s1375_s3 }
 0x9f2   :  { %v533_v18 = vpop.permute.xlu1 %532 }
 0x9f3   :  { %v535_v19 = vadd.f32 %v533_v18, %v525_v17 }
 0x9f5   :  { %1290 = vtanh.f32 %v535_v19 }
 0xa02   :  { %v1291_v20 = vpop.eup %1290 }
 0xa03   :  { %538 = vrot.lane.b32.xlu0 %v1291_v20, %s1374_s10 }
 0xa75   :  { %v539_v21 = vpop.permute.xlu0 %538 }
 0xa76   :  { %v1535_v22 = vmul.f32 %v1289_v14, %v539_v21 }
 0xa78   :  { %543 = vrot.lane.b32.xlu1 %v1535_v22, %s1375_s3 }
 0xaea   :  { %v544_v23 = vpop.permute.xlu1 %543 }
 0xaeb   :  { %1216 = vmatmul.mubr.msk.f32.vlgmr.msra.gmra.mxu1 %vm64_vm1, %v544_v23 }
 0xaec   :  { %1230 = vmatpush3.msra.mxu1 %v1424_v2  ;;  %1237 = vmatprep.mubr.msk.f32.mxu1 %vm1373_vm0, %v1372_v0 }
 0xaed   :  { %1231 = vmatprep.subr.mxu1 %v1372_v0 }
 0xaee   :  { %1232 = vmatpush3.msra.mxu1 %v1427_v4 }
 0xaef   :  { %1233 = vmatprep.subr.mxu1 %v1372_v0 }
 0xaf0   :  { %1234 = vmatpush3.msra.mxu1 %v1431_v6 }
 0xaf1   :  { %1235 = vmatprep.subr.mxu1 %v1372_v0 }
 0xaf2   :  { %1236 = vmatpush3.msra.mxu1 %v1436_v8 }
 0xbab   :  { %v613_v24 = vpop.f32.mrf.mxu1 }
 0xbac   :  { %v617_v25 = vadd.f32 %v613_v24, %v1472_v13 }
 0xbad   :  { %v1217_v26 = vpop.f32.mrf.mxu1 }
 0xbae   :  { %1292 = vtanh.f32 %v617_v25  ;;  %v1099_v28 = vmul.f32 -1.442695, %v617_v25 }
 0xbb0   :  { %1294 = vpow2.f32 %v1099_v28 }
 0xbbb   :  { %v1293_v27 = vpop.eup %1292 }
 0xbbc   :  { %627 = vrot.lane.b32.xlu0 %v1293_v27, %s1374_s10 }
 0xbbd   :  { %v1295_v30 = vpop.eup %1294 }
 0xbbe   :  { %v621_v31 = vadd.f32 1.0, %v1295_v30 }
 0xbc0   :  { %1296 = vrcp.f32 %v621_v31 }
 0xbcd   :  { %v1297_v32 = vpop.eup %1296 }
 0xbce   :  { %v625_v35 = vmul.f32 %v1297_v32, %v535_v19  ;;  %v1106_v19 = vld [vmem:[%s1621_s4] ss:$0 sm:$0xff] }
 0xc2e   :  { %v628_v33 = vpop.permute.xlu0 %627 }
 0xc2f   :  { %v630_v34 = vmul.f32 %v1297_v32, %v628_v33 }
 0xc31   :  { %632 = vrot.lane.b32.xlu1 %v630_v34, %s1375_s3 }
 0xca3   :  { %v633_v36 = vpop.permute.xlu1 %632 }
 0xca4   :  { %v635_v37 = vadd.f32 %v633_v36, %v625_v35 }
 0xca6   :  { %1298 = vtanh.f32 %v635_v37 }
 0xcb3   :  { %v1299_v38 = vpop.eup %1298 }
 0xcb4   :  { %638 = vrot.lane.b32.xlu0 %v1299_v38, %s1374_s10 }
 0xd26   :  { %v639_v39 = vpop.permute.xlu0 %638 }
 0xd27   :  { %v1553_v40 = vmul.f32 %v1297_v32, %v639_v39 }
 0xd29   :  { %643 = vrot.lane.b32.xlu1 %v1553_v40, %s1375_s3 }
 0xd9b   :  { %v644_v41 = vpop.permute.xlu1 %643 }
 0xd9c   :  { %1227 = vmatmul.mubr.msk.f32.vlgmr.msra.gmra.mxu0 %vm64_vm1, %v644_v41 }
 0xd9d   :  { %1241 = vmatpush3.msra.mxu0 %v1424_v2  ;;  %1248 = vmatprep.mubr.msk.f32.mxu0 %vm1373_vm0, %v1372_v0 }
 0xd9e   :  { %1242 = vmatprep.subr.mxu0 %v1372_v0 }
 0xd9f   :  { %1243 = vmatpush3.msra.mxu0 %v1427_v4 }
 0xda0   :  { %1244 = vmatprep.subr.mxu0 %v1372_v0 }
 0xda1   :  { %1245 = vmatpush3.msra.mxu0 %v1431_v6 }
 0xda2   :  { %1246 = vmatprep.subr.mxu0 %v1372_v0 }
 0xda3   :  { %1247 = vmatpush3.msra.mxu0 %v1436_v8 }
 0xe5c   :  { %v713_v42 = vpop.f32.mrf.mxu0 }
 0xe5d   :  { %v717_v43 = vadd.f32 %v713_v42, %v1472_v13 }
 0xe5e   :  { %v1228_v44 = vpop.f32.mrf.mxu0 }
 0xe5f   :  { %1300 = vtanh.f32 %v717_v43  ;;  %v1101_v45 = vmul.f32 -1.442695, %v717_v43 }
 0xe61   :  { %1302 = vpow2.f32 %v1101_v45 }
 0xe6c   :  { %v1301_v2 = vpop.eup %1300 }
 0xe6d   :  { %727 = vrot.lane.b32.xlu0 %v1301_v2, %s1374_s10 }
 0xe6e   :  { %v1303_v47 = vpop.eup %1302 }
 0xe6f   :  { %v721_v4 = vadd.f32 1.0, %v1303_v47 }
 0xe71   :  { %1304 = vrcp.f32 %v721_v4 }
 0xe7e   :  { %v1305_v48 = vpop.eup %1304 }
 0xe7f   :  { %v725_v0 = vmul.f32 %v1305_v48, %v635_v37 }
 0xedf   :  { %v728_v49 = vpop.permute.xlu0 %727 }
 0xee0   :  { %v730_v6 = vmul.f32 %v1305_v48, %v728_v49 }
 0xee2   :  { %732 = vrot.lane.b32.xlu1 %v730_v6, %s1375_s3 }
 0xf54   :  { %v733_v8 = vpop.permute.xlu1 %732 }
 0xf55   :  { %v735_v50 = vadd.f32 %v733_v8, %v725_v0 }
 0xf57   :  { %1306 = vtanh.f32 %v735_v50 }
 0xf64   :  { %v1307_v51 = vpop.eup %1306 }
 0xf65   :  { %738 = vrot.lane.b32.xlu0 %v1307_v51, %s1374_s10 }
 0xfd7   :  { %v739_v52 = vpop.permute.xlu0 %738 }
 0xfd8   :  { %v1571_v53 = vmul.f32 %v1305_v48, %v739_v52 }
 0xfda   :  { %743 = vrot.lane.b32.xlu1 %v1571_v53, %s1375_s3 }
0x104c   :  { %v744_v54 = vpop.permute.xlu1 %743 }
0x104d   :  { %1238 = vmatmul.mubr.msk.f32.vlgmr.msra.gmra.mxu1 %vm64_vm1, %v744_v54 }
0x110d   :  { %v813_v55 = vpop.f32.mrf.mxu1 }
0x110e   :  { %v817_v56 = vadd.f32 %v813_v55, %v1472_v13  ;;  %v1015_v55 = vstv %s1622_s5 }
0x110f   :  { %v1239_v57 = vpop.f32.mrf.mxu1 }
0x1110   :  { %1308 = vtanh.f32 %v817_v56  ;;  %v1103_v59 = vmul.f32 -1.442695, %v817_v56 }
0x1112   :  { %1310 = vpow2.f32 %v1103_v59 }
0x111d   :  { %v1309_v58 = vpop.eup %1308 }
0x111e   :  { %827 = vrot.lane.b32.xlu0 %v1309_v58, %s1374_s10 }
0x111f   :  { %v1311_v60 = vpop.eup %1310 }
0x1120   :  { %v821_v61 = vadd.f32 1.0, %v1311_v60 }
0x1122   :  { %1312 = vrcp.f32 %v821_v61 }
0x112f   :  { %v1313_v62 = vpop.eup %1312 }
0x1130   :  { %v825_v5 = vmul.f32 %v1313_v62, %v735_v50  ;;  %v1032_v50 = vlaneseq }
0x1132   :  { %v1035_v54 = vshrl.u32 %v1032_v50, 7 }
0x1190   :  { %v828_v1 = vpop.permute.xlu0 %827 }
0x1191   :  { %v830_v3 = vmul.f32 %v1313_v62, %v828_v1 }
0x1193   :  { %832 = vrot.lane.b32.xlu1 %v830_v3, %s1375_s3 }
0x1205   :  { %v833_v7 = vpop.permute.xlu1 %832 }
0x1206   :  { %v835_v9 = vadd.f32 %v833_v7, %v825_v5 }
0x1208   :  { %1314 = vtanh.f32 %v835_v9 }
0x1215   :  { %v1315_v10 = vpop.eup %1314 }
0x1216   :  { %838 = vrot.lane.b32.xlu0 %v1315_v10, %s1374_s10 }
0x1288   :  { %v839_v11 = vpop.permute.xlu0 %838 }
0x1289   :  { %v841_v12 = vmul.f32 %v1313_v62, %v839_v11 }
0x128b   :  { %843 = vrot.lane.b32.xlu1 %v841_v12, %s1375_s3 }
0x12fd   :  { %v844_v14 = vpop.permute.xlu1 %843 }
0x12fe   :  { %1249 = vmatmul.mubr.msk.f32.vlgmr.msra.gmra.mxu0 %vm64_vm1, %v844_v14 }
0x13be   :  { %v913_v15 = vpop.f32.mrf.mxu0 }
0x13bf   :  { %v917_v16 = vadd.f32 %v913_v15, %v1472_v13 }
0x13c0   :  { %v1250_v17 = vpop.f32.mrf.mxu0 }
0x13c1   :  { %1316 = vtanh.f32 %v917_v16  ;;  %v1105_v20 = vmul.f32 -1.442695, %v917_v16 }
0x13c3   :  { %1318 = vpow2.f32 %v1105_v20 }
0x13ce   :  { %v1317_v18 = vpop.eup %1316 }
0x13cf   :  { %927 = vrot.lane.b32.xlu0 %v1317_v18, %s1374_s10 }
0x13d0   :  { %v1319_v21 = vpop.eup %1318 }
0x13d1   :  { %v921_v23 = vadd.f32 1.0, %v1319_v21 }
0x13d3   :  { %947 = vrot.lane.b32.xlu0 %v1106_v19, %s1376_s13  ;;  %1320 = vrcp.f32 %v921_v23 }
0x13e0   :  { %v1321_v24 = vpop.eup %1320 }
0x13e1   :  { %v925_v32 = vmul.f32 %v1321_v24, %v835_v9 }
0x1441   :  { %v928_v25 = vpop.permute.xlu0 %927 }
0x1442   :  { %v930_v26 = vmul.f32 %v1321_v24, %v928_v25 }
0x1444   :  { %932 = vrot.lane.b32.xlu1 %v930_v26, %s1375_s3 }
0x1445   :  { %v948_v13 = vpop.permute.xlu0 %947 }
0x1446   :  { %v950_v27 = vmul.f32 %v948_v13, %v1478_v29  ;;  %v952_v28 = vmul.f32 %v948_v13, %v1516_v63  ;;  %v954_v30 = vmul.f32 %v948_v13, %v1553_v40  ;;  %v956_v31 = vmul.f32 %v948_v13, %v841_v12 }
0x1447   :  { %v951_v38 = vmul.f32 %v948_v13, %v1497_v46  ;;  %v953_v39 = vmul.f32 %v948_v13, %v1535_v22  ;;  %v955_v40 = vmul.f32 %v948_v13, %v1571_v53  ;;  %v1033_v53 = vand.u32 127, %v1032_v50 }
0x1448   :  { %966 = vrot.lane.b32.xlu0 %v950_v27, %s1375_s3 }
0x1449   :  { %v1036_v58 = vsub.s32 %v1033_v53, %v1035_v54 }
0x144c   :  { %970 = vrot.lane.b32.xlu0 %v952_v28, %s1375_s3 }
0x1450   :  { %974 = vrot.lane.b32.xlu0 %v954_v30, %s1375_s3 }
0x1454   :  { %978 = vrot.lane.b32.xlu0 %v956_v31, %s1375_s3 }
0x14b6   :  { %v933_v33 = vpop.permute.xlu1 %932 }
0x14b7   :  { %v935_v34 = vadd.f32 %v933_v33, %v925_v32 }
0x14b9   :  { %1322 = vtanh.f32 %v935_v34 }
0x14ba   :  { %v967_v35 = vpop.permute.xlu0 %966 }
0x14bb   :  { %v991_v29 = vsel %vm990_vm2, %v967_v35, 0.0 }
0x14bc   :  { %992 = vadd.xlane.f32.xlu0 %v991_v29 }
0x14be   :  { %v971_v36 = vpop.permute.xlu0 %970 }
0x14bf   :  { %v997_v63 = vsel %vm990_vm2, %v971_v36, 0.0 }
0x14c0   :  { %998 = vadd.xlane.f32.xlu0 %v997_v63 }
0x14c2   :  { %v975_v22 = vpop.permute.xlu0 %974 }
0x14c3   :  { %v1003_v48 = vsel %vm990_vm2, %v975_v22, 0.0 }
0x14c6   :  { %v1323_v37 = vpop.eup %1322  ;;  %v979_v49 = vpop.permute.xlu0 %978 }
0x14c7   :  { %938 = vrot.lane.b32.xlu1 %v1323_v37, %s1374_s10  ;;  %v1009_v6 = vsel %vm990_vm2, %v979_v49, 0.0 }
0x14cb   :  { %968 = vrot.lane.b32.xlu1 %v951_v38, %s1375_s3 }
0x14cf   :  { %972 = vrot.lane.b32.xlu1 %v953_v39, %s1375_s3 }
0x14d3   :  { %976 = vrot.lane.b32.xlu1 %v955_v40, %s1375_s3 }
0x1539   :  { %v939_v41 = vpop.permute.xlu1 %938 }
0x153a   :  { %v941_v42 = vmul.f32 %v1321_v24, %v939_v41 }
0x153c   :  { %v957_v43 = vmul.f32 %v948_v13, %v941_v42 }
0x153d   :  { %v969_v44 = vpop.permute.xlu1 %968 }
0x153e   :  { %980 = vrot.lane.b32.xlu1 %v957_v43, %s1375_s3  ;;  %v994_v4 = vsel %vm990_vm2, %v969_v44, 0.0 }
0x1541   :  { %v973_v2 = vpop.permute.xlu1 %972 }
0x1542   :  { %v1000_v45 = vsel %vm990_vm2, %v973_v2, 0.0 }
0x1543   :  { %1001 = vadd.xlane.f32.xlu0 %v1000_v45 }
0x1545   :  { %v977_v46 = vpop.permute.xlu1 %976  ;;  %v993_v51 = vpop.xlane.xlu0 %992 }
0x1546   :  { %v1006_v47 = vsel %vm990_vm2, %v977_v46, 0.0  ;;  %v1016_v59 = vadd.f32 %v1015_v55, %v993_v51 }
0x1547   :  { %1007 = vadd.xlane.f32.xlu0 %v1006_v47 }
0x1548   :  { %v1037_v3 = vrot.slane %v1016_v59, %v1036_v58 }
0x1549   :  { %v999_v57 = vpop.xlane.xlu0 %998 }
0x154a   :  { %v1018_v62 = vadd.f32 %v1015_v55, %v999_v57 }
0x154c   :  { %v1045_v9 = vrot.slane %v1018_v62, %v1036_v58 }
0x1562   :  { %995 = vadd.xlane.f32.xlu1 %v994_v4 }
0x1566   :  { %1004 = vadd.xlane.f32.xlu1 %v1003_v48 }
0x156a   :  { %1010 = vadd.xlane.f32.xlu1 %v1009_v6 }
0x15b0   :  { %v981_v0 = vpop.permute.xlu1 %980 }
0x15b1   :  { %v1012_v8 = vsel %vm990_vm2, %v981_v0, 0.0 }
0x15b2   :  { %1013 = vadd.xlane.f32.xlu0 %v1012_v8 }
0x15cc   :  { %v1002_v1 = vpop.xlane.xlu0 %1001 }
0x15cd   :  { %v1019_v5 = vadd.f32 %v1015_v55, %v1002_v1 }
0x15cf   :  { %v1049_v15 = vrot.slane %v1019_v5, %v1036_v58 }
0x15d0   :  { %v1008_v12 = vpop.xlane.xlu0 %1007 }
0x15d1   :  { %v1021_v18 = vadd.f32 %v1015_v55, %v1008_v12 }
0x15d3   :  { %v1057_v24 = vrot.slane %v1021_v18, %v1036_v58 }
0x15eb   :  { %v996_v52 = vpop.xlane.xlu1 %995 }
0x15ec   :  { %v1017_v56 = vadd.f32 %v1015_v55, %v996_v52 }
0x15ee   :  { %v1041_v60 = vrot.slane %v1017_v56, %v1036_v58 }
0x15ef   :  { %v1005_v61 = vpop.xlane.xlu1 %1004 }
0x15f0   :  { %v1067_v7 = vsel %vm1066_vm3, %v1041_v60, %v1037_v3  ;;  %v1020_v10 = vadd.f32 %v1015_v55, %v1005_v61 }
0x15f1   :  { %v1069_v14 = vsel %vm1068_vm4, %v1045_v9, %v1067_v7 }
0x15f2   :  { %v1053_v16 = vrot.slane %v1020_v10, %v1036_v58  ;;  %v1071_v19 = vsel %vm1070_vm5, %v1049_v15, %v1069_v14 }
0x15f3   :  { %v1011_v11 = vpop.xlane.xlu1 %1010 }
0x15f4   :  { %v1022_v17 = vadd.f32 %v1015_v55, %v1011_v11  ;;  %v1073_v20 = vsel %vm1072_vm6, %v1053_v16, %v1071_v19 }
0x15f5   :  { %v1075_v26 = vsel %vm1074_vm7, %v1057_v24, %v1073_v20 }
0x15f6   :  { %v1061_v21 = vrot.slane %v1022_v17, %v1036_v58 }
0x15f8   :  { %v1077_v27 = vsel %vm1076_vm8, %v1061_v21, %v1075_v26 }
0x163b   :  { %v1014_v23 = vpop.xlane.xlu0 %1013 }
0x163c   :  { %v1023_v25 = vadd.f32 %v1015_v55, %v1014_v23 }
0x163e   :  { %v1065_v13 = vrot.slane %v1023_v25, %v1036_v58 }
0x1640   :  { %v1079_v28 = vsel %vm1078_vm9, %v1065_v13, %v1077_v27 }
0x1641   :  { %1082 = vst.msk [vmem:[%s1623_s6] sm:$0xff] %vm1081_vm10, %v1079_v28 }
0x1642   :  { %1087 = vsyncpa [#allocation4], 1 }
0x1643   :  { %1088 = vsyncpa [#allocation6], 1 }

</bundles_post_ra>
